<compile_context>
chip_gen: v5e
topology: v5e:2x2
jax: 0.10.0
libtpu: 0.0.40
codegen_flags: <defaults>
</compile_context>

<pallas_src>
import jax
import jax.numpy as jnp
from jax.experimental import pallas as pl
from jax.experimental.pallas import tpu as pltpu

MAX_DEST = 30
MAX_SOURCE = 30
PAD_INPUT_DIM = (MAX_SOURCE + MAX_DEST) * 3   # 180
TOTAL_INPUT_DIM = PAD_INPUT_DIM * 2           # 360
EMBED_DIM = 128

HEAD_W = MAX_SOURCE + MAX_DEST                # fused head logit width (60)
PACK_W = 192                                  # lane-dense packed output width
OFF_EMB = 0
OFF_SRC = EMBED_DIM                           # 128
OFF_DST = EMBED_DIM + MAX_SOURCE              # 158
OFF_VAL = OFF_DST + MAX_DEST                  # 188
OFF_PAD = OFF_VAL + 1                         # 189


# ----------------------------- glue (plain JAX) -----------------------------

def pad_input_state_and_mask(state, mask):
    """Matches the PyTorch helper: pad with zeros up to PAD_INPUT_DIM or crop."""
    d = state.shape[-1]
    if d < PAD_INPUT_DIM:
        pad = PAD_INPUT_DIM - d
        state = jnp.pad(state, ((0, 0), (0, pad)))
        mask = jnp.pad(mask, ((0, 0), (0, pad)))
    elif d > PAD_INPUT_DIM:
        state = state[:, :PAD_INPUT_DIM]
        mask = mask[:, :PAD_INPUT_DIM]
    return state, mask


def init_params(key, embed_dim=EMBED_DIM):
    """Deterministic synthetic parameters.  Weights stored as (in, out)."""
    def lin(key, fan_in, fan_out):
        k1, k2 = jax.random.split(key)
        bound = 1.0 / jnp.sqrt(fan_in)
        w = jax.random.uniform(k1, (fan_in, fan_out), jnp.float32, -bound, bound)
        b = jax.random.uniform(k2, (1, fan_out), jnp.float32, -bound, bound)
        return w, b

    keys = jax.random.split(key, 10)
    p = {}
    p["ws1"], p["bs1"] = lin(keys[0], PAD_INPUT_DIM, embed_dim)   # state_encoder[0]
    p["ws2"], p["bs2"] = lin(keys[1], embed_dim, embed_dim)       # state_encoder[2]
    p["wm1"], p["bm1"] = lin(keys[2], PAD_INPUT_DIM, embed_dim)   # mask_encoder[0]
    p["wm2"], p["bm2"] = lin(keys[3], embed_dim, embed_dim)       # mask_encoder[2]
    wc, p["bc"] = lin(keys[4], 2 * embed_dim, embed_dim)          # combined_fc[0]
    p["wc_s"], p["wc_m"] = wc[:embed_dim], wc[embed_dim:]
    p["wsrc"], p["bsrc"] = lin(keys[5], embed_dim, MAX_SOURCE)    # source_head
    wdst, p["bdst"] = lin(keys[6], embed_dim + MAX_SOURCE, MAX_DEST)  # cond_dest_head
    p["wdst_e"], p["wdst_o"] = wdst[:embed_dim], wdst[embed_dim:]
    wcr1, p["bcr1"] = lin(keys[7], TOTAL_INPUT_DIM, embed_dim)    # critic_net[0]
    p["wcr1_s"], p["wcr1_m"] = wcr1[:PAD_INPUT_DIM], wcr1[PAD_INPUT_DIM:]
    p["wcr2"], p["bcr2"] = lin(keys[8], embed_dim, 1)             # critic_net[2]
    p["temperature_param"] = jnp.float32(0.0)                     # -> temperature = 1.0
    return p


def _round_up(x, m):
    return ((x + m - 1) // m) * m


def _batch_tiling(b):
    """Return (tile_rows, padded_batch).  Small batch -> one tile; large batch
    -> >=2 grid steps (v7x TensorCore split) with tiles up to 1024 rows."""
    b8 = _round_up(max(b, 1), 8)
    if b8 <= 256:
        return b8, b8
    n_tiles = max(2, -(-b8 // 1024))          # ceil, at least 2 steps
    tb = _round_up(-(-b8 // n_tiles), 8)
    return tb, tb * n_tiles


def prepare_params(params):
    """One-time parameter fusion (hoisted out of the per-call jit):
    first-layer weight concat, encoder-2 fold into combined_fc, head fusion
    with temperature folded in.  Returns a tuple of resident-weight arrays."""
    inv_t = jnp.exp(-params["temperature_param"]).astype(jnp.float32)

    w_in_s = jnp.concatenate([params["ws1"], params["wcr1_s"]], axis=1)   # (180,256)
    w_in_m = jnp.concatenate([params["wm1"], params["wcr1_m"]], axis=1)   # (180,256)
    w_sc = params["ws2"] @ params["wc_s"]                                  # (128,128)
    w_mc = params["wm2"] @ params["wc_m"]                                  # (128,128)
    w_smc = jnp.concatenate([w_sc, w_mc], axis=0)                          # (256,128)
    b_comb = params["bs2"] @ params["wc_s"] + params["bm2"] @ params["wc_m"] + params["bc"]
    w_head = jnp.concatenate([params["wsrc"], params["wdst_e"]], axis=1) * inv_t  # (128,60)
    b_head = jnp.concatenate([params["bsrc"], params["bdst"]], axis=1) * inv_t    # (1,60)
    w_dst_o = params["wdst_o"] * inv_t                                            # (30,30)

    return (
        w_in_s, params["bs1"], w_in_m, params["bm1"], params["bcr1"],
        w_smc, b_comb,
        w_head, b_head, w_dst_o,
        params["wcr2"], params["bcr2"],
    )


# ------------------------------- Pallas kernel -------------------------------

def _elu(x):
    return jnp.where(x > 0, x, jnp.exp(x) - 1.0)


def _softmax(x):
    m = jnp.max(x, axis=-1, keepdims=True)
    e = jnp.exp(x - m)
    # exact division keeps the 1e-4 self-check tight
    return e / jnp.sum(e, axis=-1, keepdims=True)


def _forward_kernel(
    state_ref, mask_ref, sel_ref,                 # (TB,180) (TB,180) (TB,1)i32
    w_in_s, b_s1, w_in_m, b_m1, b_cr1,            # fused first layers + biases
    w_smc, b_comb,                                # folded encoder-2 + combined_fc
    w_head, b_head, w_dst_o,                      # fused heads (temp pre-folded)
    w_cr2, b_cr2,                                 # critic layer 2
    out_ref,                                      # (TB, 192) packed output
):
    f32 = jnp.float32
    state = state_ref[...]
    mask = mask_ref[...]
    tb = state.shape[0]

    # Fused first layers: one K=180, N=256 dot per input.
    # cols [0:128]   -> encoder hidden (pre-ELU, pre-bias)
    # cols [128:256] -> critic first-layer partial sums
    s_all = jnp.dot(state, w_in_s[...], preferred_element_type=f32)
    m_all = jnp.dot(mask, w_in_m[...], preferred_element_type=f32)

    h_s = _elu(s_all[:, :EMBED_DIM] + b_s1[...])
    h_m = _elu(m_all[:, :EMBED_DIM] + b_m1[...])
    h_v = _elu(s_all[:, EMBED_DIM:] + m_all[:, EMBED_DIM:] + b_cr1[...])

    # encoder layer 2 folded into combined_fc, both branches fused into one
    # K=256 dot (concat boundary is 128-aligned -> no lane shuffle).
    h_sm = jnp.concatenate([h_s, h_m], axis=-1)                  # (TB, 256)
    emb = _elu(jnp.dot(h_sm, w_smc[...], preferred_element_type=f32) + b_comb[...])

    # critic head
    value = jnp.dot(h_v, w_cr2[...], preferred_element_type=f32) + b_cr2[...]

    # fused source / dest(emb-part) heads, temperature already folded in
    head = jnp.dot(emb, w_head[...], preferred_element_type=f32) + b_head[...]
    src_logits = head[:, :MAX_SOURCE]

    # conditional dest head: one_hot(selected_source) via iota compare
    onehot = (
        jax.lax.broadcasted_iota(jnp.int32, (tb, MAX_SOURCE), 1) == sel_ref[...]
    ).astype(f32)
    dst_logits = head[:, MAX_SOURCE:] + jnp.dot(
        onehot, w_dst_o[...], preferred_element_type=f32
    )

    # single full-width store of the lane-dense packed slab
    out_ref[...] = jnp.concatenate(
        [
            emb,
            _softmax(src_logits),
            _softmax(dst_logits),
            value,
            jnp.zeros((tb, PACK_W - OFF_PAD), f32),
        ],
        axis=-1,
    )


# --------------------------------- wrapper -----------------------------------

@jax.jit
def steel_plate_forward(weights, state, mask, selected_source):
    """weights = prepare_params(params).  Returns
    (source_policy, dest_policy, value, emb) as in the PyTorch forward with
    selected_source provided."""
    state_pad, mask_pad = pad_input_state_and_mask(state, mask)
    state_pad = state_pad.astype(jnp.float32)
    mask_pad = mask_pad.astype(jnp.float32)
    B = state_pad.shape[0]

    # ---- batch tiling / padding (no K padding: width stays 180) ----
    tb, b_pad = _batch_tiling(B)
    extra = b_pad - B
    state_t = jnp.pad(state_pad, ((0, extra), (0, 0)))
    mask_t = jnp.pad(mask_pad, ((0, extra), (0, 0)))
    sel = jnp.pad(
        selected_source.astype(jnp.int32).reshape(B, 1), ((0, extra), (0, 0))
    )

    grid = (b_pad // tb,)

    batch_spec = lambda width: pl.BlockSpec((tb, width), lambda i: (i, 0))
    const_spec = lambda arr: pl.BlockSpec(arr.shape, lambda i: (0, 0))

    in_specs = [
        batch_spec(PAD_INPUT_DIM),                # state (TB, 180)
        batch_spec(PAD_INPUT_DIM),                # mask  (TB, 180)
        pl.BlockSpec((tb, 1), lambda i: (i, 0)),  # selected_source
    ] + [const_spec(w) for w in weights]

    out = pl.pallas_call(
        _forward_kernel,
        out_shape=jax.ShapeDtypeStruct((b_pad, PACK_W), jnp.float32),
        grid=grid,
        in_specs=in_specs,
        out_specs=pl.BlockSpec((tb, PACK_W), lambda i: (i, 0)),
        compiler_params=pltpu.CompilerParams(
            dimension_semantics=(pltpu.PARALLEL,)),
    )(state_t, mask_t, sel, *weights)

    emb = out[:B, OFF_EMB:OFF_SRC]
    src_pol = out[:B, OFF_SRC:OFF_DST]
    dst_pol = out[:B, OFF_DST:OFF_VAL]
    value = out[:B, OFF_VAL:OFF_PAD]
    return src_pol, dst_pol, value, emb


# -------------------------- pure-JAX reference check --------------------------

def _reference_forward(params, state, mask, selected_source):
    state_pad, mask_pad = pad_input_state_and_mask(state, mask)
    state_pad = state_pad.astype(jnp.float32)
    mask_pad = mask_pad.astype(jnp.float32)

    def elu(x):
        return jnp.where(x > 0, x, jnp.exp(x) - 1.0)

    state_emb = elu(state_pad @ params["ws1"] + params["bs1"]) @ params["ws2"] + params["bs2"]
    mask_emb = elu(mask_pad @ params["wm1"] + params["bm1"]) @ params["wm2"] + params["bm2"]
    combined = jnp.concatenate([state_emb, mask_emb], axis=-1)
    wc = jnp.concatenate([params["wc_s"], params["wc_m"]], axis=0)
    emb = elu(combined @ wc + params["bc"])
    temp = jnp.exp(params["temperature_param"])
    src_pol = jax.nn.softmax((emb @ params["wsrc"] + params["bsrc"]) / temp, axis=-1)
    x = jnp.concatenate([state_pad, mask_pad], axis=-1)
    wcr1 = jnp.concatenate([params["wcr1_s"], params["wcr1_m"]], axis=0)
    value = elu(x @ wcr1 + params["bcr1"]) @ params["wcr2"] + params["bcr2"]
    onehot = jax.nn.one_hot(selected_source, MAX_SOURCE, dtype=jnp.float32)
    wdst = jnp.concatenate([params["wdst_e"], params["wdst_o"]], axis=0)
    cond = jnp.concatenate([emb, onehot], axis=-1)
    dst_pol = jax.nn.softmax((cond @ wdst + params["bdst"]) / temp, axis=-1)
    return src_pol, dst_pol, value, emb


def _check(params, weights, state, mask, sel):
    src_pol, dst_pol, value, emb = steel_plate_forward(weights, state, mask, sel)
    jax.block_until_ready((src_pol, dst_pol, value, emb))
    r_src, r_dst, r_val, r_emb = _reference_forward(params, state, mask, sel)
    assert jnp.allclose(src_pol, r_src, atol=1e-4, rtol=1e-4)
    assert jnp.allclose(dst_pol, r_dst, atol=1e-4, rtol=1e-4)
    assert jnp.allclose(value, r_val, atol=1e-4, rtol=1e-4)
    assert jnp.allclose(emb, r_emb, atol=1e-4, rtol=1e-4)


# ----------------------------------- main -------------------------------------

if __name__ == "__main__":
    key = jax.random.PRNGKey(0)
    k_param, k_state, k_mask, k_sel = jax.random.split(key, 4)

    params = init_params(k_param)
    weights = prepare_params(params)            # one-time parameter fusion

    # Small batch (single grid step, exercises the D<PAD_INPUT_DIM padding path)
    B, D_RAW = 8, 167
    state = jax.random.normal(k_state, (B, D_RAW), jnp.float32)
    mask = (jax.random.uniform(k_mask, (B, D_RAW)) > 0.5).astype(jnp.float32)
    sel = jax.random.randint(k_sel, (B,), 0, MAX_SOURCE, jnp.int32)
    _check(params, weights, state, mask, sel)

    # Larger batch (2 grid steps -> pipelined + v7x core split, batch padding)
    B2 = 300
    state2 = jax.random.normal(k_state, (B2, PAD_INPUT_DIM), jnp.float32)
    mask2 = (jax.random.uniform(k_mask, (B2, PAD_INPUT_DIM)) > 0.5).astype(jnp.float32)
    sel2 = jax.random.randint(k_sel, (B2,), 0, MAX_SOURCE, jnp.int32)
    _check(params, weights, state2, mask2, sel2)

    print("KERNEL_OK")
</pallas_src>

<mosaic_0001>
module attributes {stable_mosaic.version = 11 : i64} {
  func.func @_forward_kernel(%arg0: i32, %arg1: memref<8x180xf32, #tpu.memory_space<vmem>>, %arg2: memref<8x180xf32, #tpu.memory_space<vmem>>, %arg3: memref<8x1xi32, #tpu.memory_space<vmem>>, %arg4: memref<180x256xf32, #tpu.memory_space<vmem>>, %arg5: memref<1x128xf32, #tpu.memory_space<vmem>>, %arg6: memref<180x256xf32, #tpu.memory_space<vmem>>, %arg7: memref<1x128xf32, #tpu.memory_space<vmem>>, %arg8: memref<1x128xf32, #tpu.memory_space<vmem>>, %arg9: memref<256x128xf32, #tpu.memory_space<vmem>>, %arg10: memref<1x128xf32, #tpu.memory_space<vmem>>, %arg11: memref<128x60xf32, #tpu.memory_space<vmem>>, %arg12: memref<1x60xf32, #tpu.memory_space<vmem>>, %arg13: memref<30x30xf32, #tpu.memory_space<vmem>>, %arg14: memref<128x1xf32, #tpu.memory_space<vmem>>, %arg15: memref<1x1xf32, #tpu.memory_space<vmem>>, %arg16: memref<8x192xf32, #tpu.memory_space<vmem>>) attributes {dimension_semantics = [#tpu.dimension_semantics<parallel>], iteration_bounds = array<i64: 1>, scalar_prefetch = 0 : i64, scratch_operands = 0 : i64, tpu.core_type = #tpu.core_type<tc>, window_params = [{transform_indices = @transform_0, window_bounds = array<i64: 8, 180>}, {transform_indices = @transform_1, window_bounds = array<i64: 8, 180>}, {transform_indices = @transform_2, window_bounds = array<i64: 8, 1>}, {pipeline_mode = #tpu.pipeline_mode<synchronous>, transform_indices = @transform_3, window_bounds = array<i64: 180, 256>}, {pipeline_mode = #tpu.pipeline_mode<synchronous>, transform_indices = @transform_4, window_bounds = array<i64: 1, 128>}, {pipeline_mode = #tpu.pipeline_mode<synchronous>, transform_indices = @transform_5, window_bounds = array<i64: 180, 256>}, {pipeline_mode = #tpu.pipeline_mode<synchronous>, transform_indices = @transform_6, window_bounds = array<i64: 1, 128>}, {pipeline_mode = #tpu.pipeline_mode<synchronous>, transform_indices = @transform_7, window_bounds = array<i64: 1, 128>}, {pipeline_mode = #tpu.pipeline_mode<synchronous>, transform_indices = @transform_8, window_bounds = array<i64: 256, 128>}, {pipeline_mode = #tpu.pipeline_mode<synchronous>, transform_indices = @transform_9, window_bounds = array<i64: 1, 128>}, {pipeline_mode = #tpu.pipeline_mode<synchronous>, transform_indices = @transform_10, window_bounds = array<i64: 128, 60>}, {pipeline_mode = #tpu.pipeline_mode<synchronous>, transform_indices = @transform_11, window_bounds = array<i64: 1, 60>}, {pipeline_mode = #tpu.pipeline_mode<synchronous>, transform_indices = @transform_12, window_bounds = array<i64: 30, 30>}, {pipeline_mode = #tpu.pipeline_mode<synchronous>, transform_indices = @transform_13, window_bounds = array<i64: 128, 1>}, {pipeline_mode = #tpu.pipeline_mode<synchronous>, transform_indices = @transform_14, window_bounds = array<i64: 1, 1>}, {transform_indices = @transform_15, window_bounds = array<i64: 8, 192>}]} {
    %c0 = arith.constant 0 : index
    %c0_0 = arith.constant 0 : index
    %0 = vector.load %arg1[%c0, %c0_0] : memref<8x180xf32, #tpu.memory_space<vmem>>, vector<8x180xf32>
    %c0_1 = arith.constant 0 : index
    %c0_2 = arith.constant 0 : index
    %1 = vector.load %arg2[%c0_1, %c0_2] : memref<8x180xf32, #tpu.memory_space<vmem>>, vector<8x180xf32>
    %c0_3 = arith.constant 0 : index
    %c0_4 = arith.constant 0 : index
    %2 = vector.load %arg4[%c0_3, %c0_4] : memref<180x256xf32, #tpu.memory_space<vmem>>, vector<180x256xf32>
    %cst = arith.constant dense<0.000000e+00> : vector<8x256xf32>
    %3 = tpu.matmul %0, %2, %cst {dimension_numbers = #tpu.dot_dimension_numbers<[1], [0], [0], [1], [0, 0, 1, 1], [], []>} : vector<8x180xf32>, vector<180x256xf32>, vector<8x256xf32> -> vector<8x256xf32>
    %c0_5 = arith.constant 0 : index
    %c0_6 = arith.constant 0 : index
    %4 = vector.load %arg6[%c0_5, %c0_6] : memref<180x256xf32, #tpu.memory_space<vmem>>, vector<180x256xf32>
    %cst_7 = arith.constant dense<0.000000e+00> : vector<8x256xf32>
    %5 = tpu.matmul %1, %4, %cst_7 {dimension_numbers = #tpu.dot_dimension_numbers<[1], [0], [0], [1], [0, 0, 1, 1], [], []>} : vector<8x180xf32>, vector<180x256xf32>, vector<8x256xf32> -> vector<8x256xf32>
    %6 = vector.extract_strided_slice %3 {offsets = [0, 0], sizes = [8, 128], strides = [1, 1]} : vector<8x256xf32> to vector<8x128xf32>
    %c0_8 = arith.constant 0 : index
    %c0_9 = arith.constant 0 : index
    %7 = vector.load %arg5[%c0_8, %c0_9] : memref<1x128xf32, #tpu.memory_space<vmem>>, vector<1x128xf32>
    %8 = vector.broadcast %7 : vector<1x128xf32> to vector<8x128xf32>
    %9 = arith.addf %6, %8 : vector<8x128xf32>
    %cst_10 = arith.constant 0.000000e+00 : f32
    %10 = vector.broadcast %cst_10 : f32 to vector<8x128xf32>
    %11 = arith.cmpf ogt, %9, %10 : vector<8x128xf32>
    %12 = math.exp %9 : vector<8x128xf32>
    %cst_11 = arith.constant 1.000000e+00 : f32
    %13 = vector.broadcast %cst_11 : f32 to vector<8x128xf32>
    %14 = arith.subf %12, %13 : vector<8x128xf32>
    %15 = arith.select %11, %9, %14 : vector<8x128xi1>, vector<8x128xf32>
    %16 = vector.extract_strided_slice %5 {offsets = [0, 0], sizes = [8, 128], strides = [1, 1]} : vector<8x256xf32> to vector<8x128xf32>
    %c0_12 = arith.constant 0 : index
    %c0_13 = arith.constant 0 : index
    %17 = vector.load %arg7[%c0_12, %c0_13] : memref<1x128xf32, #tpu.memory_space<vmem>>, vector<1x128xf32>
    %18 = vector.broadcast %17 : vector<1x128xf32> to vector<8x128xf32>
    %19 = arith.addf %16, %18 : vector<8x128xf32>
    %cst_14 = arith.constant 0.000000e+00 : f32
    %20 = vector.broadcast %cst_14 : f32 to vector<8x128xf32>
    %21 = arith.cmpf ogt, %19, %20 : vector<8x128xf32>
    %22 = math.exp %19 : vector<8x128xf32>
    %cst_15 = arith.constant 1.000000e+00 : f32
    %23 = vector.broadcast %cst_15 : f32 to vector<8x128xf32>
    %24 = arith.subf %22, %23 : vector<8x128xf32>
    %25 = arith.select %21, %19, %24 : vector<8x128xi1>, vector<8x128xf32>
    %26 = vector.extract_strided_slice %3 {offsets = [0, 128], sizes = [8, 128], strides = [1, 1]} : vector<8x256xf32> to vector<8x128xf32>
    %27 = vector.extract_strided_slice %5 {offsets = [0, 128], sizes = [8, 128], strides = [1, 1]} : vector<8x256xf32> to vector<8x128xf32>
    %28 = arith.addf %26, %27 : vector<8x128xf32>
    %c0_16 = arith.constant 0 : index
    %c0_17 = arith.constant 0 : index
    %29 = vector.load %arg8[%c0_16, %c0_17] : memref<1x128xf32, #tpu.memory_space<vmem>>, vector<1x128xf32>
    %30 = vector.broadcast %29 : vector<1x128xf32> to vector<8x128xf32>
    %31 = arith.addf %28, %30 : vector<8x128xf32>
    %cst_18 = arith.constant 0.000000e+00 : f32
    %32 = vector.broadcast %cst_18 : f32 to vector<8x128xf32>
    %33 = arith.cmpf ogt, %31, %32 : vector<8x128xf32>
    %34 = math.exp %31 : vector<8x128xf32>
    %cst_19 = arith.constant 1.000000e+00 : f32
    %35 = vector.broadcast %cst_19 : f32 to vector<8x128xf32>
    %36 = arith.subf %34, %35 : vector<8x128xf32>
    %37 = arith.select %33, %31, %36 : vector<8x128xi1>, vector<8x128xf32>
    %38 = tpu.concatenate %15, %25 in 1 : vector<8x128xf32>, vector<8x128xf32> -> vector<8x256xf32>
    %c0_20 = arith.constant 0 : index
    %c0_21 = arith.constant 0 : index
    %39 = vector.load %arg9[%c0_20, %c0_21] : memref<256x128xf32, #tpu.memory_space<vmem>>, vector<256x128xf32>
    %cst_22 = arith.constant dense<0.000000e+00> : vector<8x128xf32>
    %40 = tpu.matmul %38, %39, %cst_22 {dimension_numbers = #tpu.dot_dimension_numbers<[1], [0], [0], [1], [0, 0, 1, 1], [], []>} : vector<8x256xf32>, vector<256x128xf32>, vector<8x128xf32> -> vector<8x128xf32>
    %c0_23 = arith.constant 0 : index
    %c0_24 = arith.constant 0 : index
    %41 = vector.load %arg10[%c0_23, %c0_24] : memref<1x128xf32, #tpu.memory_space<vmem>>, vector<1x128xf32>
    %42 = vector.broadcast %41 : vector<1x128xf32> to vector<8x128xf32>
    %43 = arith.addf %40, %42 : vector<8x128xf32>
    %cst_25 = arith.constant 0.000000e+00 : f32
    %44 = vector.broadcast %cst_25 : f32 to vector<8x128xf32>
    %45 = arith.cmpf ogt, %43, %44 : vector<8x128xf32>
    %46 = math.exp %43 : vector<8x128xf32>
    %cst_26 = arith.constant 1.000000e+00 : f32
    %47 = vector.broadcast %cst_26 : f32 to vector<8x128xf32>
    %48 = arith.subf %46, %47 : vector<8x128xf32>
    %49 = arith.select %45, %43, %48 : vector<8x128xi1>, vector<8x128xf32>
    %c0_27 = arith.constant 0 : index
    %c0_28 = arith.constant 0 : index
    %50 = vector.load %arg14[%c0_27, %c0_28] : memref<128x1xf32, #tpu.memory_space<vmem>>, vector<128x1xf32>
    %cst_29 = arith.constant dense<0.000000e+00> : vector<8x1xf32>
    %51 = tpu.matmul %37, %50, %cst_29 {dimension_numbers = #tpu.dot_dimension_numbers<[1], [0], [0], [1], [0, 0, 1, 1], [], []>} : vector<8x128xf32>, vector<128x1xf32>, vector<8x1xf32> -> vector<8x1xf32>
    %c0_30 = arith.constant 0 : index
    %c0_31 = arith.constant 0 : index
    %52 = vector.load %arg15[%c0_30, %c0_31] : memref<1x1xf32, #tpu.memory_space<vmem>>, vector<1x1xf32>
    %53 = vector.broadcast %52 : vector<1x1xf32> to vector<8x1xf32>
    %54 = arith.addf %51, %53 : vector<8x1xf32>
    %c0_32 = arith.constant 0 : index
    %c0_33 = arith.constant 0 : index
    %55 = vector.load %arg11[%c0_32, %c0_33] : memref<128x60xf32, #tpu.memory_space<vmem>>, vector<128x60xf32>
    %cst_34 = arith.constant dense<0.000000e+00> : vector<8x60xf32>
    %56 = tpu.matmul %49, %55, %cst_34 {dimension_numbers = #tpu.dot_dimension_numbers<[1], [0], [0], [1], [0, 0, 1, 1], [], []>} : vector<8x128xf32>, vector<128x60xf32>, vector<8x60xf32> -> vector<8x60xf32>
    %c0_35 = arith.constant 0 : index
    %c0_36 = arith.constant 0 : index
    %57 = vector.load %arg12[%c0_35, %c0_36] : memref<1x60xf32, #tpu.memory_space<vmem>>, vector<1x60xf32>
    %58 = vector.broadcast %57 : vector<1x60xf32> to vector<8x60xf32>
    %59 = arith.addf %56, %58 : vector<8x60xf32>
    %60 = vector.extract_strided_slice %59 {offsets = [0, 0], sizes = [8, 30], strides = [1, 1]} : vector<8x60xf32> to vector<8x30xf32>
    %61 = tpu.iota {dimensions = array<i32: 1>} : vector<8x30xi32>
    %c0_37 = arith.constant 0 : index
    %c0_38 = arith.constant 0 : index
    %62 = vector.load %arg3[%c0_37, %c0_38] : memref<8x1xi32, #tpu.memory_space<vmem>>, vector<8x1xi32>
    %63 = vector.broadcast %62 : vector<8x1xi32> to vector<8x30xi32>
    %64 = arith.cmpi eq, %61, %63 : vector<8x30xi32>
    %65 = arith.extui %64 : vector<8x30xi1> to vector<8x30xi32>
    %66 = arith.sitofp %65 : vector<8x30xi32> to vector<8x30xf32>
    %67 = vector.extract_strided_slice %59 {offsets = [0, 30], sizes = [8, 30], strides = [1, 1]} : vector<8x60xf32> to vector<8x30xf32>
    %c0_39 = arith.constant 0 : index
    %c0_40 = arith.constant 0 : index
    %68 = vector.load %arg13[%c0_39, %c0_40] : memref<30x30xf32, #tpu.memory_space<vmem>>, vector<30x30xf32>
    %cst_41 = arith.constant dense<0.000000e+00> : vector<8x30xf32>
    %69 = tpu.matmul %66, %68, %cst_41 {dimension_numbers = #tpu.dot_dimension_numbers<[1], [0], [0], [1], [0, 0, 1, 1], [], []>} : vector<8x30xf32>, vector<30x30xf32>, vector<8x30xf32> -> vector<8x30xf32>
    %70 = arith.addf %67, %69 : vector<8x30xf32>
    %cst_42 = arith.constant dense<0xFF800000> : vector<8xf32>
    %71 = vector.multi_reduction <maximumf>, %60, %cst_42 [1] : vector<8x30xf32> to vector<8xf32>
    %72 = vector.shape_cast %71 : vector<8xf32> to vector<8x1xf32>
    %73 = vector.broadcast %72 : vector<8x1xf32> to vector<8x30xf32>
    %74 = arith.subf %60, %73 : vector<8x30xf32>
    %75 = math.exp %74 : vector<8x30xf32>
    %cst_43 = arith.constant dense<0.000000e+00> : vector<8xf32>
    %76 = vector.multi_reduction <add>, %75, %cst_43 [1] : vector<8x30xf32> to vector<8xf32>
    %77 = vector.shape_cast %76 : vector<8xf32> to vector<8x1xf32>
    %78 = vector.broadcast %77 : vector<8x1xf32> to vector<8x30xf32>
    %79 = arith.divf %75, %78 : vector<8x30xf32>
    %cst_44 = arith.constant dense<0xFF800000> : vector<8xf32>
    %80 = vector.multi_reduction <maximumf>, %70, %cst_44 [1] : vector<8x30xf32> to vector<8xf32>
    %81 = vector.shape_cast %80 : vector<8xf32> to vector<8x1xf32>
    %82 = vector.broadcast %81 : vector<8x1xf32> to vector<8x30xf32>
    %83 = arith.subf %70, %82 : vector<8x30xf32>
    %84 = math.exp %83 : vector<8x30xf32>
    %cst_45 = arith.constant dense<0.000000e+00> : vector<8xf32>
    %85 = vector.multi_reduction <add>, %84, %cst_45 [1] : vector<8x30xf32> to vector<8xf32>
    %86 = vector.shape_cast %85 : vector<8xf32> to vector<8x1xf32>
    %87 = vector.broadcast %86 : vector<8x1xf32> to vector<8x30xf32>
    %88 = arith.divf %84, %87 : vector<8x30xf32>
    %cst_46 = arith.constant 0.000000e+00 : f32
    %89 = vector.broadcast %cst_46 : f32 to vector<8x3xf32>
    %90 = tpu.concatenate %49, %79, %88, %54, %89 in 1 : vector<8x128xf32>, vector<8x30xf32>, vector<8x30xf32>, vector<8x1xf32>, vector<8x3xf32> -> vector<8x192xf32>
    %c0_47 = arith.constant 0 : index
    %c0_48 = arith.constant 0 : index
    %91 = vector.load %arg16[%c0_47, %c0_48] : memref<8x192xf32, #tpu.memory_space<vmem>>, vector<8x192xf32>
    tpu.vector_store %arg16[%c0_47, %c0_48], %90 {strides = array<i32>} : memref<8x192xf32, #tpu.memory_space<vmem>>, vector<8x192xf32>,
    return
  }
  func.func @transform_0(%arg0: i32) -> (i32, i32) {
    %c0_i32 = arith.constant 0 : i32
    %c0_i32_0 = arith.constant 0 : i32
    return %arg0, %c0_i32 : i32, i32
  }
  func.func @transform_1(%arg0: i32) -> (i32, i32) {
    %c0_i32 = arith.constant 0 : i32
    %c0_i32_0 = arith.constant 0 : i32
    return %arg0, %c0_i32 : i32, i32
  }
  func.func @transform_2(%arg0: i32) -> (i32, i32) {
    %c0_i32 = arith.constant 0 : i32
    %c0_i32_0 = arith.constant 0 : i32
    return %arg0, %c0_i32 : i32, i32
  }
  func.func @transform_3(%arg0: i32) -> (i32, i32) {
    %c0_i32 = arith.constant 0 : i32
    %c0_i32_0 = arith.constant 0 : i32
    %c0_i32_1 = arith.constant 0 : i32
    return %c0_i32, %c0_i32_0 : i32, i32
  }
  func.func @transform_4(%arg0: i32) -> (i32, i32) {
    %c0_i32 = arith.constant 0 : i32
    %c0_i32_0 = arith.constant 0 : i32
    %c0_i32_1 = arith.constant 0 : i32
    return %c0_i32, %c0_i32_0 : i32, i32
  }
  func.func @transform_5(%arg0: i32) -> (i32, i32) {
    %c0_i32 = arith.constant 0 : i32
    %c0_i32_0 = arith.constant 0 : i32
    %c0_i32_1 = arith.constant 0 : i32
    return %c0_i32, %c0_i32_0 : i32, i32
  }
  func.func @transform_6(%arg0: i32) -> (i32, i32) {
    %c0_i32 = arith.constant 0 : i32
    %c0_i32_0 = arith.constant 0 : i32
    %c0_i32_1 = arith.constant 0 : i32
    return %c0_i32, %c0_i32_0 : i32, i32
  }
  func.func @transform_7(%arg0: i32) -> (i32, i32) {
    %c0_i32 = arith.constant 0 : i32
    %c0_i32_0 = arith.constant 0 : i32
    %c0_i32_1 = arith.constant 0 : i32
    return %c0_i32, %c0_i32_0 : i32, i32
  }
  func.func @transform_8(%arg0: i32) -> (i32, i32) {
    %c0_i32 = arith.constant 0 : i32
    %c0_i32_0 = arith.constant 0 : i32
    %c0_i32_1 = arith.constant 0 : i32
    return %c0_i32, %c0_i32_0 : i32, i32
  }
  func.func @transform_9(%arg0: i32) -> (i32, i32) {
    %c0_i32 = arith.constant 0 : i32
    %c0_i32_0 = arith.constant 0 : i32
    %c0_i32_1 = arith.constant 0 : i32
    return %c0_i32, %c0_i32_0 : i32, i32
  }
  func.func @transform_10(%arg0: i32) -> (i32, i32) {
    %c0_i32 = arith.constant 0 : i32
    %c0_i32_0 = arith.constant 0 : i32
    %c0_i32_1 = arith.constant 0 : i32
    return %c0_i32, %c0_i32_0 : i32, i32
  }
  func.func @transform_11(%arg0: i32) -> (i32, i32) {
    %c0_i32 = arith.constant 0 : i32
    %c0_i32_0 = arith.constant 0 : i32
    %c0_i32_1 = arith.constant 0 : i32
    return %c0_i32, %c0_i32_0 : i32, i32
  }
  func.func @transform_12(%arg0: i32) -> (i32, i32) {
    %c0_i32 = arith.constant 0 : i32
    %c0_i32_0 = arith.constant 0 : i32
    %c0_i32_1 = arith.constant 0 : i32
    return %c0_i32, %c0_i32_0 : i32, i32
  }
  func.func @transform_13(%arg0: i32) -> (i32, i32) {
    %c0_i32 = arith.constant 0 : i32
    %c0_i32_0 = arith.constant 0 : i32
    %c0_i32_1 = arith.constant 0 : i32
    return %c0_i32, %c0_i32_0 : i32, i32
  }
  func.func @transform_14(%arg0: i32) -> (i32, i32) {
    %c0_i32 = arith.constant 0 : i32
    %c0_i32_0 = arith.constant 0 : i32
    %c0_i32_1 = arith.constant 0 : i32
    return %c0_i32, %c0_i32_0 : i32, i32
  }
  func.func @transform_15(%arg0: i32) -> (i32, i32) {
    %c0_i32 = arith.constant 0 : i32
    %c0_i32_0 = arith.constant 0 : i32
    return %arg0, %c0_i32 : i32, i32
  }
}

</mosaic_0001>

<bundles_post_ra>
// kernel: steel_plate_forward.1
= control target key start
LH: loop header
LB: loop body
LE: loop exit
PB: predicated region body
PF: predicated region fallthrough
CT: control target
= control target key end

     0   :  { %s1131_s0 = inlined_call_operand.vmem [shape: f32[8,180], index: 0, kind: input, shape index: {}]   ;;  %s1132_s1 = inlined_call_operand.vmem [shape: f32[8,180], index: 1, kind: input, shape index: {}]   ;;  %s1133_s2 = inlined_call_operand.vmem [shape: s32[8,1], index: 2, kind: input, shape index: {}]   ;;  %s1134_s3 = inlined_call_operand.hbm [shape: f32[180,256], index: 3, kind: input, shape index: {}]   ;;  %s1135_s4 = inlined_call_operand.vmem [shape: f32[1,128], index: 4, kind: input, shape index: {}]   ;;  %s1136_s5 = inlined_call_operand.hbm [shape: f32[180,256], index: 5, kind: input, shape index: {}]   ;;  %s1137_s6 = inlined_call_operand.vmem [shape: f32[1,128], index: 6, kind: input, shape index: {}]   ;;  %s1138_s7 = inlined_call_operand.vmem [shape: f32[1,128], index: 7, kind: input, shape index: {}]   ;;  %s1139_s8 = inlined_call_operand.vmem [shape: f32[256,128], index: 8, kind: input, shape index: {}]   ;;  %s1140_s9 = inlined_call_operand.vmem [shape: f32[1,128], index: 9, kind: input, shape index: {}]   ;;  %s1141_s10 = inlined_call_operand.vmem [shape: f32[128,60], index: 10, kind: input, shape index: {}]   ;;  %s1142_s11 = inlined_call_operand.vmem [shape: f32[1,60], index: 11, kind: input, shape index: {}]   ;;  %s1143_s12 = inlined_call_operand.vmem [shape: f32[30,30], index: 12, kind: input, shape index: {}]   ;;  %s1144_s13 = inlined_call_operand.vmem [shape: f32[128,1], index: 13, kind: input, shape index: {}]   ;;  %s1145_s14 = inlined_call_operand.<no memory space> [shape: f32[1,1], index: 14, kind: input, shape index: {}]   ;;  %s1146_s15 = inlined_call_operand.vmem [shape: f32[8,192], index: 15, kind: output, shape index: {}]  }
   0x1   :  { %v20_v0 = vstv %s1145_s14 }
   0x2   :  { %21 = vst [vmem:[#allocation2] sm:$0x1] %v20_v0 }
   0x3   :  { %22 = vsyncpa [#allocation4], 0  ;;  %s34_s22 = sshll.u32 %s1134_s3, 4  ;;  %s35_s22 = int_to_ptr.hbm [resolvable:$true] %s34_s22 }
   0x4   :  { %23 = vsyncpa [#allocation6], 0  ;;  %s768_s23 = smov [#allocation3]   ;;  %s49_s27 = sshll.u32 %s1136_s5, 4  ;;  %s50_s27 = int_to_ptr.hbm [resolvable:$true] %s49_s27 }
   0x5   :  { %s36_s24 = sshll.u32 %s768_s23, 4  ;;  %s769_s28 = smov 256   ;;  %s37_s24 = int_to_ptr.vmem [resolvable:$true] %s36_s24 }
   0x6   :  { %s770_s29 = smov 16   ;;  %s771_s14 = smov [#allocation5]  }
   0x7   :  { %42 = dma.hbm_to_vmem [thread:$0]  %s35_s22, 5888, %s37_s24, [#allocation4], %s769_s28, %s769_s28, %s770_s29  }
   0x8   :  { %s51_s30 = sshll.u32 %s771_s14, 4  ;;  %s52_s30 = int_to_ptr.vmem [resolvable:$true] %s51_s30 }
   0x9   :  { %57 = dma.hbm_to_vmem [thread:$0]  %s50_s27, 5888, %s52_s30, [#allocation6], %s769_s28, %s769_s28, %s770_s29  }
   0xa   :  { %764 = dma.done.wait [#allocation4], 5888  }
   0xb   :  { %765 = vsyncadd [#allocation4], 4294961408 }
   0xc   :  { %766 = dma.done.wait [#allocation6], 5888  }
   0xd   :  { %767 = vsyncadd [#allocation6], 4294961408  ;;  %vm138_vm0 = vcmask 1043456   ;;  %v118_v1 = vld [vmem:[#allocation3 + $0xf0] sm:$0xff]  ;;  %v132_v2 = vld [vmem:[#allocation3 + $0x160] sm:$0xf] }
   0xe   :  { %v116_v3 = vld [vmem:[#allocation3 + $0xe0] sm:$0xff]  ;;  %145 = vmatpush.msra.mxu0 %v118_v1  ;;  %669 = vmatpush.msk.msra.mxu1 %vm138_vm0, %v132_v2  ;;  %v130_v4 = vld [vmem:[#allocation3 + $0x150] sm:$0xff]  ;;  %vm134_vm1 = vcmask 424960   ;;  %v119_v27 = vld [vmem:[#allocation3 + $0xf8] sm:$0xff]  ;;  %v772_v37 = vmov 0   ;;  %vm569_vm2 = vcmask 1045504  }
   0xf   :  { %v114_v5 = vld [vmem:[#allocation3 + $0xd0] sm:$0xff]  ;;  %v128_v6 = vld [vmem:[#allocation3 + $0x140] sm:$0xff]  ;;  %185 = vmatpush.msra.mxu2 %v119_v27  ;;  %v117_v30 = vld [vmem:[#allocation3 + $0xe8] sm:$0xff]  ;;  %693 = vset.pattern.permute.xlu0 %v772_v37  ;;  %vm565_vm5 = vcmask 244736   ;;  %vm622_vm9 = vcmask 490736  }
  0x10   :  { %146 = vmatpush.msra.mxu0 %v116_v3  ;;  %175 = vmatpush.msra.mxu1 %v130_v4  ;;  %v112_v7 = vld [vmem:[#allocation3 + $0xc0] sm:$0xff]  ;;  %v126_v8 = vld [vmem:[#allocation3 + $0x130] sm:$0xff]  ;;  %v115_v40 = vld [vmem:[#allocation3 + $0xd8] sm:$0xff] }
  0x11   :  { %v110_v9 = vld [vmem:[#allocation3 + $0xb0] sm:$0xff]  ;;  %v124_v10 = vld [vmem:[#allocation3 + $0x120] sm:$0xff]  ;;  %186 = vmatpush.msra.mxu2 %v117_v30  ;;  %v256_v42 = vld [vmem:[#allocation5 + $0xf8] sm:$0xff] }
  0x12   :  { %147 = vmatpush.msra.mxu0 %v114_v5  ;;  %176 = vmatpush.msra.mxu1 %v128_v6  ;;  %v108_v11 = vld [vmem:[#allocation3 + $0xa0] sm:$0xff]  ;;  %v122_v12 = vld [vmem:[#allocation3 + $0x110] sm:$0xff]  ;;  %v113_v44 = vld [vmem:[#allocation3 + $0xc8] sm:$0xff] }
  0x13   :  { %v269_v13 = vld [vmem:[#allocation5 + $0x160] sm:$0xf]  ;;  %v120_v15 = vld [vmem:[#allocation3 + $0x100] sm:$0xff]  ;;  %187 = vmatpush.msra.mxu2 %v115_v40  ;;  %v254_v46 = vld [vmem:[#allocation5 + $0xe8] sm:$0xff] }
  0x14   :  { %148 = vmatpush.msra.mxu0 %v112_v7  ;;  %177 = vmatpush.msra.mxu1 %v126_v8  ;;  %v106_v14 = vld [vmem:[#allocation3 + $0x90] sm:$0xff]  ;;  %v267_v16 = vld [vmem:[#allocation5 + $0x150] sm:$0xff]  ;;  %v111_v48 = vld [vmem:[#allocation3 + $0xb8] sm:$0xff] }
  0x15   :  { %673 = vmatpush.msk.msra.mxu3 %vm138_vm0, %v269_v13  ;;  %v255_v17 = vld [vmem:[#allocation5 + $0xf0] sm:$0xff]  ;;  %v265_v18 = vld [vmem:[#allocation5 + $0x140] sm:$0xff]  ;;  %188 = vmatpush.msra.mxu2 %v113_v44  ;;  %v252_v50 = vld [vmem:[#allocation5 + $0xd8] sm:$0xff] }
  0x16   :  { %149 = vmatpush.msra.mxu0 %v110_v9  ;;  %178 = vmatpush.msra.mxu1 %v124_v10  ;;  %v104_v19 = vld [vmem:[#allocation3 + $0x80] sm:$0xff]  ;;  %v253_v21 = vld [vmem:[#allocation5 + $0xe0] sm:$0xff]  ;;  %v109_v53 = vld [vmem:[#allocation3 + $0xa8] sm:$0xff] }
  0x17   :  { %310 = vmatpush.msra.mxu3 %v267_v16  ;;  %v871_v20 = vld [vmem:[%s1131_s0 + $0x8] sm:$0xff]  ;;  %v102_v23 = vld [vmem:[#allocation3 + $0x70] sm:$0xff]  ;;  %v554_v38 = vld [vmem:[%s1133_s2] sm:$0xff]  ;;  %189 = vmatpush.msra.mxu2 %v111_v48 }
  0x18   :  { %150 = vmatpush.msra.mxu0 %v108_v11  ;;  %179 = vmatpush.msra.mxu1 %v122_v12  ;;  %v263_v22 = vld [vmem:[#allocation5 + $0x130] sm:$0xff]  ;;  %v261_v25 = vld [vmem:[#allocation5 + $0x120] sm:$0xff]  ;;  %v107_v56 = vld [vmem:[#allocation3 + $0x98] sm:$0xff] }
  0x19   :  { %311 = vmatpush.msra.mxu3 %v265_v18  ;;  %v251_v24 = vld [vmem:[#allocation5 + $0xd0] sm:$0xff]  ;;  %v249_v28 = vld [vmem:[#allocation5 + $0xc0] sm:$0xff]  ;;  %556 = vperm.xlu0 %693, %v554_v38   ;;  %v250_v57 = vld [vmem:[#allocation5 + $0xc8] sm:$0xff] }
  0x1a   :  { %151 = vmatpush.msra.mxu0 %v106_v14  ;;  %180 = vmatpush.msra.mxu1 %v120_v15  ;;  %v100_v26 = vld [vmem:[#allocation3 + $0x60] sm:$0xff]  ;;  %v98_v31 = vld [vmem:[#allocation3 + $0x50] sm:$0xff]  ;;  %v270_v58 = vld [vmem:[#allocation5 + $0x168] sm:$0xf] }
  0x1b   :  { %670 = vmatmul.msk.f32.vlgmr.msra.gmra.mxu1 %vm134_vm1, %v871_v20  ;;  %312 = vmatpush.msra.mxu3 %v263_v22  ;;  %v259_v29 = vld [vmem:[#allocation5 + $0x110] sm:$0xff]  ;;  %v257_v33 = vld [vmem:[#allocation5 + $0x100] sm:$0xff]  ;;  %v105_v59 = vld [vmem:[#allocation3 + $0x88] sm:$0xff] }
  0x1c   :  { %280 = vmatpush.msrb.mxu1 %v255_v17  ;;  %152 = vmatpush.msra.mxu0 %v104_v19  ;;  %v247_v32 = vld [vmem:[#allocation5 + $0xb0] sm:$0xff]  ;;  %v245_v36 = vld [vmem:[#allocation5 + $0xa0] sm:$0xff]  ;;  %v248_v60 = vld [vmem:[#allocation5 + $0xb8] sm:$0xff] }
  0x1d   :  { %313 = vmatpush.msra.mxu3 %v261_v25  ;;  %v96_v34 = vld [vmem:[#allocation3 + $0x40] sm:$0xff]  ;;  %v94_v39 = vld [vmem:[#allocation3 + $0x30] sm:$0xff]  ;;  %190 = vmatpush.msra.mxu2 %v109_v53  ;;  %v268_v62 = vld [vmem:[#allocation5 + $0x158] sm:$0xff] }
  0x1e   :  { %281 = vmatpush.msrb.mxu1 %v253_v21  ;;  %153 = vmatpush.msra.mxu0 %v102_v23  ;;  %v878_v35 = vld [vmem:[%s1132_s1 + $0x8] sm:$0xff]  ;;  %v241_v45 = vld [vmem:[#allocation5 + $0x80] sm:$0xff]  ;;  %v888_v52 = vld [vmem:[%s1131_s0] sm:$0xff] }
  0x1f   :  { %314 = vmatpush.msra.mxu3 %v259_v29  ;;  %v243_v41 = vld [vmem:[#allocation5 + $0x90] sm:$0xff]  ;;  %v90_v47 = vld [vmem:[#allocation3 + $0x10] sm:$0xff]  ;;  %191 = vmatpush.msra.mxu2 %v107_v56  ;;  %v103_v63 = vld [vmem:[#allocation3 + $0x78] sm:$0xff] }
  0x20   :  { %282 = vmatpush.msrb.mxu1 %v251_v24  ;;  %154 = vmatpush.msra.mxu0 %v100_v26  ;;  %v92_v43 = vld [vmem:[#allocation3 + $0x20] sm:$0xff]  ;;  %v237_v54 = vld [vmem:[#allocation5 + $0x60] sm:$0xff]  ;;  %v246_v0 = vld [vmem:[#allocation5 + $0xa8] sm:$0xff] }
  0x21   :  { %315 = vmatpush.msra.mxu3 %v257_v33  ;;  %v239_v49 = vld [vmem:[#allocation5 + $0x70] sm:$0xff]  ;;  %v233_v61 = vld [vmem:[#allocation5 + $0x40] sm:$0xff]  ;;  %192 = vmatpush.msra.mxu2 %v105_v59  ;;  %v266_v2 = vld [vmem:[#allocation5 + $0x148] sm:$0xff] }
  0x22   :  { %283 = vmatpush.msrb.mxu1 %v249_v28  ;;  %155 = vmatpush.msra.mxu0 %v98_v31  ;;  %v88_v51 = vld [vmem:[#allocation3] sm:$0xff]  ;;  %v101_v3 = vld [vmem:[#allocation3 + $0x68] sm:$0xff]  ;;  %v229_v5 = vld [vmem:[#allocation5 + $0x20] sm:$0xff] }
  0x23   :  { %674 = vmatmul.msk.f32.vlgmr.msra.gmra.mxu3 %vm134_vm1, %v878_v35  ;;  %v235_v55 = vld [vmem:[#allocation5 + $0x50] sm:$0xff]  ;;  %v244_v4 = vld [vmem:[#allocation5 + $0x98] sm:$0xff]  ;;  %193 = vmatpush.msra.mxu2 %v103_v63  ;;  %v99_v7 = vld [vmem:[#allocation3 + $0x58] sm:$0xff] }
  0x24   :  { %284 = vmatpush.msrb.mxu1 %v247_v32  ;;  %156 = vmatpush.msra.mxu0 %v96_v34  ;;  %v231_v1 = vld [vmem:[#allocation5 + $0x30] sm:$0xff]  ;;  %v264_v6 = vld [vmem:[#allocation5 + $0x138] sm:$0xff]  ;;  %v242_v8 = vld [vmem:[#allocation5 + $0x88] sm:$0xff] }
  0x25   :  { %320 = vmatpush.msrb.mxu3 %v256_v42  ;;  %v227_v9 = vld [vmem:[#allocation5 + $0x10] sm:$0xff]  ;;  %194 = vmatpush.msra.mxu2 %v101_v3  ;;  %v262_v10 = vld [vmem:[#allocation5 + $0x128] sm:$0xff]  ;;  %v97_v11 = vld [vmem:[#allocation3 + $0x48] sm:$0xff] }
  0x26   :  { %285 = vmatpush.msrb.mxu1 %v245_v36  ;;  %157 = vmatpush.msra.mxu0 %v94_v39  ;;  %v240_v12 = vld [vmem:[#allocation5 + $0x78] sm:$0xff]  ;;  %v225_v13 = vld [vmem:[#allocation5] sm:$0xff]  ;;  %v86_v15 = vld [vmem:[%s1132_s1] sm:$0xff] }
  0x27   :  { %321 = vmatpush.msrb.mxu3 %v254_v46  ;;  %195 = vmatpush.msra.mxu2 %v99_v7  ;;  %v260_v14 = vld [vmem:[#allocation5 + $0x118] sm:$0xff]  ;;  %v95_v16 = vld [vmem:[#allocation3 + $0x38] sm:$0xff] }
  0x28   :  { %286 = vmatpush.msrb.mxu1 %v243_v41  ;;  %158 = vmatpush.msra.mxu0 %v92_v43  ;;  %v238_v17 = vld [vmem:[#allocation5 + $0x68] sm:$0xff]  ;;  %v93_v19 = vld [vmem:[#allocation3 + $0x28] sm:$0xff] }
  0x29   :  { %322 = vmatpush.msrb.mxu3 %v252_v50  ;;  %196 = vmatpush.msra.mxu2 %v97_v11  ;;  %v258_v18 = vld [vmem:[#allocation5 + $0x108] sm:$0xff]  ;;  %v236_v21 = vld [vmem:[#allocation5 + $0x58] sm:$0xff] }
  0x2a   :  { %287 = vmatpush.msrb.mxu1 %v241_v45  ;;  %159 = vmatpush.msra.mxu0 %v90_v47  ;;  %v91_v22 = vld [vmem:[#allocation3 + $0x18] sm:$0xff]  ;;  %v89_v25 = vld [vmem:[#allocation3 + $0x8] sm:$0xff] }
  0x2b   :  { %323 = vmatpush.msrb.mxu3 %v250_v57  ;;  %197 = vmatpush.msra.mxu2 %v95_v16  ;;  %v422_v23 = vld [vmem:[%s1139_s8 + $0xf8] sm:$0xff]  ;;  %v133_v26 = vld [vmem:[#allocation3 + $0x168] sm:$0xf]  ;;  %v405_v38 = vld [vmem:[%s1139_s8 + $0x70] sm:$0xff] }
  0x2c   :  { %288 = vmatpush.msrb.mxu1 %v239_v49  ;;  %160 = vmatpush.msra.mxu0 %v88_v51  ;;  %v234_v24 = vld [vmem:[#allocation5 + $0x48] sm:$0xff]  ;;  %v232_v27 = vld [vmem:[#allocation5 + $0x38] sm:$0xff] }
  0x2d   :  { %161 = vmatmul.f32.vlgmr.msra.gmra.mxu0 %v888_v52  ;;  %324 = vmatpush.msrb.mxu3 %v248_v60  ;;  %v131_v28 = vld [vmem:[#allocation3 + $0x158] sm:$0xff]  ;;  %v129_v30 = vld [vmem:[#allocation3 + $0x148] sm:$0xff] }
  0x2e   :  { %289 = vmatpush.msrb.mxu1 %v237_v54  ;;  %675 = vmatpush.msk.msrb.mxu0 %vm138_vm0, %v270_v58  ;;  %v230_v29 = vld [vmem:[#allocation5 + $0x28] sm:$0xff]  ;;  %v228_v31 = vld [vmem:[#allocation5 + $0x18] sm:$0xff] }
  0x2f   :  { %325 = vmatpush.msrb.mxu3 %v246_v0  ;;  %198 = vmatpush.msra.mxu2 %v93_v19  ;;  %v127_v32 = vld [vmem:[#allocation3 + $0x138] sm:$0xff]  ;;  %v125_v34 = vld [vmem:[#allocation3 + $0x128] sm:$0xff] }
  0x30   :  { %290 = vmatpush.msrb.mxu1 %v235_v55  ;;  %350 = vmatpush.msrb.mxu0 %v268_v62  ;;  %v226_v33 = vld [vmem:[#allocation5 + $0x8] sm:$0xff]  ;;  %v121_v36 = vld [vmem:[#allocation3 + $0x108] sm:$0xff] }
  0x31   :  { %326 = vmatpush.msrb.mxu3 %v244_v4  ;;  %199 = vmatpush.msra.mxu2 %v91_v22  ;;  %v406_v37 = vld [vmem:[%s1139_s8 + $0x78] sm:$0xff]  ;;  %v404_v39 = vld [vmem:[%s1139_s8 + $0x68] sm:$0xff]  ;;  %v403_v40 = vld [vmem:[%s1139_s8 + $0x60] sm:$0xff] }
  0x32   :  { %291 = vmatpush.msrb.mxu1 %v233_v61  ;;  %351 = vmatpush.msrb.mxu0 %v266_v2  ;;  %v402_v41 = vld [vmem:[%s1139_s8 + $0x58] sm:$0xff]  ;;  %v400_v42 = vld [vmem:[%s1139_s8 + $0x48] sm:$0xff]  ;;  %v399_v43 = vld [vmem:[%s1139_s8 + $0x40] sm:$0xff] }
  0x33   :  { %327 = vmatpush.msrb.mxu3 %v242_v8  ;;  %200 = vmatpush.msra.mxu2 %v89_v25  ;;  %v421_v44 = vld [vmem:[%s1139_s8 + $0xf0] sm:$0xff]  ;;  %v398_v45 = vld [vmem:[%s1139_s8 + $0x38] sm:$0xff]  ;;  %v420_v46 = vld [vmem:[%s1139_s8 + $0xe8] sm:$0xff] }
  0x34   :  { %292 = vmatpush.msrb.mxu1 %v231_v1  ;;  %352 = vmatpush.msrb.mxu0 %v264_v6  ;;  %v397_v47 = vld [vmem:[%s1139_s8 + $0x30] sm:$0xff]  ;;  %v419_v48 = vld [vmem:[%s1139_s8 + $0xe0] sm:$0xff]  ;;  %v396_v49 = vld [vmem:[%s1139_s8 + $0x28] sm:$0xff] }
  0x35   :  { %328 = vmatpush.msrb.mxu3 %v240_v12  ;;  %671 = vmatpush.msk.msrb.mxu2 %vm138_vm0, %v133_v26  ;;  %v418_v50 = vld [vmem:[%s1139_s8 + $0xd8] sm:$0xff]  ;;  %v395_v51 = vld [vmem:[%s1139_s8 + $0x20] sm:$0xff]  ;;  %v416_v54 = vld [vmem:[%s1139_s8 + $0xc8] sm:$0xff] }
  0x36   :  { %293 = vmatpush.msrb.mxu1 %v229_v5  ;;  %353 = vmatpush.msrb.mxu0 %v262_v10  ;;  %v394_v53 = vld [vmem:[%s1139_s8 + $0x18] sm:$0xff]  ;;  %v393_v55 = vld [vmem:[%s1139_s8 + $0x10] sm:$0xff]  ;;  %v415_v56 = vld [vmem:[%s1139_s8 + $0xc0] sm:$0xff] }
  0x37   :  { %329 = vmatpush.msrb.mxu3 %v238_v17  ;;  %201 = vmatmul.f32.vlgmr.msra.gmra.mxu2 %v888_v52  ;;  %v417_v52 = vld [vmem:[%s1139_s8 + $0xd0] sm:$0xff]  ;;  %v392_v57 = vld [vmem:[%s1139_s8 + $0x8] sm:$0xff]  ;;  %v414_v58 = vld [vmem:[%s1139_s8 + $0xb8] sm:$0xff] }
  0x38   :  { %294 = vmatpush.msrb.mxu1 %v227_v9  ;;  %354 = vmatpush.msrb.mxu0 %v260_v14  ;;  %v391_v59 = vld [vmem:[%s1139_s8] sm:$0xff]  ;;  %v413_v60 = vld [vmem:[%s1139_s8 + $0xb0] sm:$0xff]  ;;  %v412_v61 = vld [vmem:[%s1139_s8 + $0xa8] sm:$0xff] }
  0x39   :  { %330 = vmatpush.msrb.mxu3 %v236_v21  ;;  %215 = vmatpush.msrb.mxu2 %v131_v28  ;;  %v411_v62 = vld [vmem:[%s1139_s8 + $0xa0] sm:$0xff]  ;;  %v410_v63 = vld [vmem:[%s1139_s8 + $0x98] sm:$0xff]  ;;  %v409_v0 = vld [vmem:[%s1139_s8 + $0x90] sm:$0xff]  ;;  %v552_v21 = vlaneseq }
  0x3a   :  { %295 = vmatpush.msrb.mxu1 %v225_v13  ;;  %355 = vmatpush.msrb.mxu0 %v258_v18  ;;  %v408_v1 = vld [vmem:[%s1139_s8 + $0x88] sm:$0xff]  ;;  %v407_v2 = vld [vmem:[%s1139_s8 + $0x80] sm:$0xff]  ;;  %v564_v4 = vld [vmem:[%s1143_s12 + $0x18] sm:$0x3f] }
  0x3b   :  { %296 = vmatmul.f32.vlgmr.msrb.gmra.mxu1 %v86_v15  ;;  %676 = vmatmul.msk.f32.vlgmr.msrb.gmra.mxu0 %vm134_vm1, %v878_v35  ;;  %v123_v35 = vld [vmem:[#allocation3 + $0x118] sm:$0xff]  ;;  %v563_v5 = vld [vmem:[%s1143_s12 + $0x10] sm:$0xff]  ;;  %v562_v10 = vld [vmem:[%s1143_s12 + $0x8] sm:$0xff] }
  0x3c   :  { %447 = vmatpush.msra.mxu0 %v422_v23  ;;  %331 = vmatpush.msrb.mxu3 %v234_v24  ;;  %v694_v6 = vld [vmem:[%s1135_s4] ss:$0 sm:$0xff]  ;;  %v487_v7 = vld [vmem:[%s1144_s13 + $0x78] sm:$0xff]  ;;  %v486_v8 = vld [vmem:[%s1144_s13 + $0x70] sm:$0xff] }
  0x3d   :  { %216 = vmatpush.msrb.mxu2 %v129_v30  ;;  %492 = vmatpush.msra.mxu1 %v487_v7  ;;  %v485_v12 = vld [vmem:[%s1144_s13 + $0x68] sm:$0xff]  ;;  %v561_v13 = vld [vmem:[%s1143_s12] sm:$0xff]  ;;  %v483_v17 = vld [vmem:[%s1144_s13 + $0x58] sm:$0xff] }
  0x3e   :  { %332 = vmatpush.msrb.mxu3 %v232_v27  ;;  %448 = vmatpush.msra.mxu0 %v421_v44  ;;  %v482_v18 = vld [vmem:[%s1144_s13 + $0x50] sm:$0xff]  ;;  %v695_v22 = vld [vmem:[%s1137_s6] ss:$0 sm:$0xff]  ;;  %v553_v27 = vand.u32 127, %v552_v21  ;;  %v515_v7 = vld [vmem:[%s1141_s10 + $0x18] sm:$0xff]  ;;  %s774_s6 = smov 30  }
  0x3f   :  { %217 = vmatpush.msrb.mxu2 %v127_v32  ;;  %493 = vmatpush.msra.mxu1 %v486_v8  ;;  %v480_v32 = vld [vmem:[%s1144_s13 + $0x40] sm:$0xff]  ;;  %v474_v44 = vld [vmem:[%s1144_s13 + $0x10] sm:$0xff] }
  0x40   :  { %333 = vmatpush.msrb.mxu3 %v230_v29  ;;  %449 = vmatpush.msra.mxu0 %v420_v46  ;;  %v514_v8 = vld [vmem:[%s1141_s10 + $0x10] sm:$0xff] }
  0x41   :  { %218 = vmatpush.msrb.mxu2 %v125_v34  ;;  %494 = vmatpush.msra.mxu1 %v485_v12  ;;  %v479_v34 = vld [vmem:[%s1144_s13 + $0x38] sm:$0xff]  ;;  %v697_v12 = vld [vmem:[%s1140_s9] ss:$0 sm:$0xff]  ;;  %s775_s9 = smov 60  }
  0x42   :  { %334 = vmatpush.msrb.mxu3 %v228_v31  ;;  %450 = vmatpush.msra.mxu0 %v419_v48  ;;  %v481_v31 = vld [vmem:[%s1144_s13 + $0x48] sm:$0xff] }
  0x43   :  { %219 = vmatpush.msrb.mxu2 %v123_v35  ;;  %v478_v35 = vld [vmem:[%s1144_s13 + $0x30] sm:$0xff]  ;;  %v473_v48 = vld [vmem:[%s1144_s13 + $0x8] sm:$0xff] }
  0x44   :  { %335 = vmatpush.msrb.mxu3 %v226_v33  ;;  %451 = vmatpush.msra.mxu0 %v418_v50  ;;  %v472_v50 = vld [vmem:[%s1144_s13] sm:$0xff] }
  0x45   :  { %336 = vmatmul.f32.vlgmr.msrb.gmra.mxu3 %v86_v15  ;;  %220 = vmatpush.msrb.mxu2 %v121_v36  ;;  %v484_v15 = vld [vmem:[%s1144_s13 + $0x60] sm:$0xff]  ;;  %v773_v36 = vmov 0.0  }
  0x46   :  { %672 = vmatmul.msk.f32.vlgmr.msrb.gmra.mxu2 %vm134_vm1, %v871_v20  ;;  %v401_v20 = vld [vmem:[%s1139_s8 + $0x50] sm:$0xff]  ;;  %452 = vmatpush.msra.mxu0 %v417_v52 }
  0x47   :  { %427 = vmatpush.msra.mxu2 %v406_v37  ;;  %495 = vmatpush.msra.mxu1 %v484_v15 }
  0x48   :  { %453 = vmatpush.msra.mxu0 %v416_v54 }
  0x49   :  { %428 = vmatpush.msra.mxu2 %v405_v38  ;;  %496 = vmatpush.msra.mxu1 %v483_v17  ;;  %v477_v38 = vld [vmem:[%s1144_s13 + $0x28] sm:$0xff] }
  0x4a   :  { %454 = vmatpush.msra.mxu0 %v415_v56 }
  0x4b   :  { %429 = vmatpush.msra.mxu2 %v404_v39  ;;  %497 = vmatpush.msra.mxu1 %v482_v18  ;;  %v476_v39 = vld [vmem:[%s1144_s13 + $0x20] sm:$0xff] }
  0x4c   :  { %455 = vmatpush.msra.mxu0 %v414_v58 }
  0x4d   :  { %430 = vmatpush.msra.mxu2 %v403_v40  ;;  %498 = vmatpush.msra.mxu1 %v481_v31 }
  0x4e   :  { %456 = vmatpush.msra.mxu0 %v413_v60 }
  0x4f   :  { %431 = vmatpush.msra.mxu2 %v402_v41  ;;  %499 = vmatpush.msra.mxu1 %v480_v32  ;;  %v475_v41 = vld [vmem:[%s1144_s13 + $0x18] sm:$0xff] }
  0x50   :  { %457 = vmatpush.msra.mxu0 %v412_v61 }
  0x51   :  { %432 = vmatpush.msra.mxu2 %v401_v20  ;;  %500 = vmatpush.msra.mxu1 %v479_v34  ;;  %v527_v20 = vld [vmem:[%s1141_s10 + $0x78] sm:$0xff] }
  0x52   :  { %458 = vmatpush.msra.mxu0 %v411_v62  ;;  %532 = vmatpush.msra.mxu3 %v527_v20 }
  0x53   :  { %433 = vmatpush.msra.mxu2 %v400_v42  ;;  %501 = vmatpush.msra.mxu1 %v478_v35  ;;  %v526_v42 = vld [vmem:[%s1141_s10 + $0x70] sm:$0xff] }
  0x54   :  { %459 = vmatpush.msra.mxu0 %v410_v63  ;;  %533 = vmatpush.msra.mxu3 %v526_v42 }
  0x55   :  { %434 = vmatpush.msra.mxu2 %v399_v43  ;;  %502 = vmatpush.msra.mxu1 %v477_v38 }
  0x56   :  { %460 = vmatpush.msra.mxu0 %v409_v0  ;;  %v522_v0 = vld [vmem:[%s1141_s10 + $0x50] sm:$0xff] }
  0x57   :  { %435 = vmatpush.msra.mxu2 %v398_v45  ;;  %503 = vmatpush.msra.mxu1 %v476_v39  ;;  %v525_v45 = vld [vmem:[%s1141_s10 + $0x68] sm:$0xff] }
  0x58   :  { %461 = vmatpush.msra.mxu0 %v408_v1  ;;  %534 = vmatpush.msra.mxu3 %v525_v45  ;;  %v521_v1 = vld [vmem:[%s1141_s10 + $0x48] sm:$0xff] }
  0x59   :  { %436 = vmatpush.msra.mxu2 %v397_v47  ;;  %504 = vmatpush.msra.mxu1 %v475_v41 }
  0x5a   :  { %462 = vmatpush.msra.mxu0 %v407_v2  ;;  %v520_v2 = vld [vmem:[%s1141_s10 + $0x40] sm:$0xff] }
  0x5b   :  { %437 = vmatpush.msra.mxu2 %v396_v49  ;;  %v524_v49 = vld [vmem:[%s1141_s10 + $0x60] sm:$0xff]  ;;  %505 = vmatpush.msra.mxu1 %v474_v44 }
  0x5c   :  { %535 = vmatpush.msra.mxu3 %v524_v49 }
  0x5d   :  { %438 = vmatpush.msra.mxu2 %v395_v51  ;;  %v523_v51 = vld [vmem:[%s1141_s10 + $0x58] sm:$0xff]  ;;  %506 = vmatpush.msra.mxu1 %v473_v48 }
  0x5e   :  { %536 = vmatpush.msra.mxu3 %v523_v51 }
  0x5f   :  { %439 = vmatpush.msra.mxu2 %v394_v53  ;;  %507 = vmatpush.msra.mxu1 %v472_v50 }
  0x60   :  { %537 = vmatpush.msra.mxu3 %v522_v0 }
  0x61   :  { %440 = vmatpush.msra.mxu2 %v393_v55 }
  0x62   :  { %538 = vmatpush.msra.mxu3 %v521_v1 }
  0x63   :  { %441 = vmatpush.msra.mxu2 %v392_v57  ;;  %v696_v57 = vld [vmem:[%s1138_s7] ss:$0 sm:$0xff] }
  0x64   :  { %539 = vmatpush.msra.mxu3 %v520_v2 }
  0x65   :  { %442 = vmatpush.msra.mxu2 %v391_v59 }
  0x67   :  { %682 = vmatpush.msk.msrb.mxu2 %vm569_vm2, %v564_v4  ;;  %v518_v4 = vld [vmem:[%s1141_s10 + $0x30] sm:$0xff]  ;;  %vm656_vm2 = vcmask 490496  }
  0x69   :  { %586 = vmatpush.msrb.mxu2 %v563_v5  ;;  %v517_v5 = vld [vmem:[%s1141_s10 + $0x28] sm:$0xff] }
  0x6b   :  { %587 = vmatpush.msrb.mxu2 %v562_v10  ;;  %v512_v10 = vld [vmem:[%s1141_s10] sm:$0xff] }
  0x6d   :  { %588 = vmatpush.msrb.mxu2 %v561_v13 }
  0x8b   :  { %v557_v30 = vpop.permute.xlu0 %556 }
  0x8c   :  { %vm558_vm4 = vcmp.eq.s32.totalorder %v553_v27, %v557_v30 }
  0x8d   :  { %v681_v37 = vsel %vm558_vm4, 1.0, %v773_v36  ;;  %vm661_vm4 = vcmask 523264  }
  0x98   :  { %v182_v3 = vpop.f32.mrf.mxu1 }
  0xa6   :  { %v317_v19 = vpop.f32.mrf.mxu3 }
  0xaa   :  { %v162_v9 = vpop.f32.mrf.mxu0 }
  0xab   :  { %v183_v11 = vadd.f32 %v182_v3, %v162_v9  ;;  %v519_v3 = vld [vmem:[%s1141_s10 + $0x38] sm:$0xff]  ;;  %v513_v9 = vld [vmem:[%s1141_s10 + $0x8] sm:$0xff] }
  0xac   :  { %540 = vmatpush.msra.mxu3 %v519_v3 }
  0xad   :  { %v364_v14 = vadd.f32 %v694_v6, %v183_v11  ;;  %v516_v6 = vld [vmem:[%s1141_s10 + $0x20] sm:$0xff] }
  0xae   :  { %541 = vmatpush.msra.mxu3 %v518_v4 }
  0xaf   :  { %v366_v16 = vmul.f32 1.442695, %v364_v14  ;;  %vm365_vm3 = vcmp.gt.f32.partialorder %v364_v14, 0.0 }
  0xb0   :  { %542 = vmatpush.msra.mxu3 %v517_v5 }
  0xb1   :  { %700 = vpow2.f32 %v366_v16 }
  0xb2   :  { %543 = vmatpush.msra.mxu3 %v516_v6 }
  0xb4   :  { %544 = vmatpush.msra.mxu3 %v515_v7 }
  0xb6   :  { %545 = vmatpush.msra.mxu3 %v514_v8 }
  0xb7   :  { %v701_v23 = vpop.eup %700 }
  0xb8   :  { %v297_v24 = vpop.f32.mrf.mxu1  ;;  %v677_v26 = vadd.f32 -1.0, %v701_v23  ;;  %v357_v53 = vpop.f32.mrf.mxu0  ;;  %546 = vmatpush.msra.mxu3 %v513_v9 }
  0xb9   :  { %v318_v25 = vadd.f32 %v317_v19, %v297_v24 }
  0xba   :  { %v369_v29 = vsel %vm365_vm3, %v364_v14, %v677_v26  ;;  %v202_v47 = vpop.f32.mrf.mxu2  ;;  %547 = vmatpush.msra.mxu3 %v512_v10  ;;  %vm658_vm3 = vcmask 498688  }
  0xbb   :  { %v374_v28 = vadd.f32 %v695_v22, %v318_v25  ;;  %443 = vmatmul.f32.vlgmr.msra.gmra.mxu2 %v369_v29  ;;  %v699_v22 = vld [vmem:[%s1142_s11] ss:$0 sm:$0xff]  ;;  %s776_s11 = smov 98  }
  0xbc   :  { %v698_v29 = vld [vmem:[#allocation2] ss:$0 sm:$0xff] }
  0xbd   :  { %v376_v33 = vmul.f32 1.442695, %v374_v28  ;;  %vm375_vm6 = vcmp.gt.f32.partialorder %v374_v28, 0.0 }
  0xbf   :  { %702 = vpow2.f32 %v376_v33 }
  0xc3   :  { %683 = vmatmul.msk.f32.vlgmr.msrb.gmra.mxu2 %vm565_vm5, %v681_v37 }
  0xc5   :  { %v703_v40 = vpop.eup %702 }
  0xc6   :  { %v678_v43 = vadd.f32 -1.0, %v703_v40 }
  0xc8   :  { %v379_v46 = vsel %vm375_vm6, %v374_v28, %v678_v43  ;;  %v337_v52 = vpop.f32.mrf.mxu3 }
  0xc9   :  { %463 = vmatmul.f32.vlgmr.msra.gmra.mxu0 %v379_v46  ;;  %v358_v54 = vadd.f32 %v357_v53, %v337_v52  ;;  %v222_v55 = vpop.f32.mrf.mxu2 }
  0xca   :  { %v223_v56 = vadd.f32 %v222_v55, %v202_v47 }
  0xcc   :  { %v380_v58 = vadd.f32 %v358_v54, %v223_v56 }
  0xce   :  { %v385_v59 = vadd.f32 %v696_v57, %v380_v58 }
  0xd0   :  { %v387_v60 = vmul.f32 1.442695, %v385_v59  ;;  %vm386_vm7 = vcmp.gt.f32.partialorder %v385_v59, 0.0 }
  0xd2   :  { %704 = vpow2.f32 %v387_v60 }
  0xd8   :  { %v705_v61 = vpop.eup %704 }
  0xd9   :  { %v679_v62 = vadd.f32 -1.0, %v705_v61 }
  0xdb   :  { %v390_v63 = vsel %vm386_vm7, %v385_v59, %v679_v62 }
  0xdc   :  { %508 = vmatmul.f32.vlgmr.msra.gmra.mxu1 %v390_v63 }
 0x13e   :  { %v444_v11 = vpop.f32.mrf.mxu2 }
 0x13f   :  { %v445_v13 = vadd.f32 %v697_v12, %v444_v11 }
 0x146   :  { %v464_v14 = vpop.f32.mrf.mxu0  ;;  %v590_v16 = vpop.f32.mrf.mxu2 }
 0x147   :  { %v465_v15 = vadd.f32 %v464_v14, %v445_v13  ;;  %594 = vrot.lane.b32.xlu0 %v590_v16, %s774_s6 }
 0x149   :  { %v468_v17 = vmul.f32 1.442695, %v465_v15  ;;  %vm467_vm8 = vcmp.gt.f32.partialorder %v465_v15, 0.0 }
 0x14b   :  { %706 = vpow2.f32 %v468_v17 }
 0x151   :  { %v707_v18 = vpop.eup %706 }
 0x152   :  { %v680_v19 = vadd.f32 -1.0, %v707_v18 }
 0x154   :  { %v471_v21 = vsel %vm467_vm8, %v465_v15, %v680_v19 }
 0x155   :  { %548 = vmatmul.f32.vlgmr.msra.gmra.mxu3 %v471_v21  ;;  %660 = vst [vmem:[%s1146_s15] sm:$0xff] %v471_v21 }
 0x159   :  { %v509_v30 = vpop.f32.mrf.mxu1 }
 0x15a   :  { %v510_v31 = vadd.f32 %v698_v29, %v509_v30 }
 0x1b9   :  { %v595_v24 = vpop.permute.xlu0 %594 }
 0x1d8   :  { %v549_v23 = vpop.f32.mrf.mxu3 }
 0x1d9   :  { %v550_v25 = vadd.f32 %v699_v22, %v549_v23 }
 0x1db   :  { %v597_v26 = vadd.f32 %v595_v24, %v550_v25  ;;  %v598_v28 = vsel %vm565_vm5, %v550_v25, -inf }
 0x1dd   :  { %v623_v27 = vsel %vm622_vm9, %v597_v26, -inf }
 0x1de   :  { %624 = vmax.xlane.f32.xlu1 %v623_v27 }
 0x1e6   :  { %599 = vmax.xlane.f32.xlu1 %v598_v28 }
 0x1ff   :  { %652 = vrot.lane.b32.xlu1 %v510_v31, %s775_s9 }
 0x251   :  { %v625_v32 = vpop.xlane.xlu1 %624 }
 0x252   :  { %v626_v33 = vsub.f32 %v597_v26, %v625_v32 }
 0x254   :  { %v627_v34 = vmul.f32 1.442695, %v626_v33 }
 0x256   :  { %708 = vpow2.f32 %v627_v34 }
 0x259   :  { %v600_v36 = vpop.xlane.xlu1 %599 }
 0x25a   :  { %v601_v37 = vsub.f32 %v550_v25, %v600_v36 }
 0x25c   :  { %v709_v35 = vpop.eup %708  ;;  %v602_v38 = vmul.f32 1.442695, %v601_v37 }
 0x25d   :  { %630 = vrot.lane.b32.xlu2 %v709_v35, %s776_s11 }
 0x25e   :  { %710 = vpow2.f32 %v602_v38 }
 0x264   :  { %v711_v39 = vpop.eup %710 }
 0x265   :  { %v604_v40 = vsel %vm565_vm5, %v711_v39, 0.0 }
 0x271   :  { %v653_v2 = vpop.permute.xlu1 %652 }
 0x286   :  { %605 = vadd.xlane.f32.xlu2 %v604_v40 }
 0x2b7   :  { %v631_v41 = vpop.permute.xlu2 %630 }
 0x2b8   :  { %v633_v20 = vsel %vm565_vm5, %v631_v41, 0.0 }
 0x2b9   :  { %634 = vadd.xlane.f32.xlu0 %v633_v20 }
 0x2f9   :  { %v606_v42 = vpop.xlane.xlu2 %605 }
 0x2fa   :  { %712 = vrcp.f32 %v606_v42  ;;  %v618_v51 = vand.u32 2147483648, %v606_v42  ;;  %vm612_vm11 = vweird.f32 %v606_v42  ;;  %v616_v52 = vand.u32 2147483647, %v606_v42 }
 0x2fc   :  { %v619_v58 = vor.u32 1.1754944e-38, %v618_v51  ;;  %vm617_vm14 = vcmp.eq.f32.partialorder %v616_v52, 8.507059e+37 }
 0x300   :  { %v713_v43 = vpop.eup %712 }
 0x301   :  { %v608_v44 = vmul.f32 %v713_v43, %v606_v42  ;;  %vm613_vm10 = vweird.f32 %v713_v43 }
 0x302   :  { %vm614_vm12 = vmor %vm612_vm11, %vm613_vm10 }
 0x303   :  { %v609_v45 = vsub.f32 1.0, %v608_v44 }
 0x305   :  { %v610_v47 = vmul.f32 %v713_v43, %v609_v45 }
 0x307   :  { %v611_v49 = vadd.f32 %v713_v43, %v610_v47 }
 0x309   :  { %v615_v55 = vsel %vm614_vm12, %v713_v43, %v611_v49 }
 0x30a   :  { %v620_v60 = vsel %vm617_vm14, %v619_v58, %v615_v55 }
 0x30b   :  { %v621_v0 = vmul.f32 %v711_v39, %v620_v60 }
 0x32c   :  { %v635_v46 = vpop.xlane.xlu0 %634 }
 0x32d   :  { %714 = vrcp.f32 %v635_v46  ;;  %v647_v54 = vand.u32 2147483648, %v635_v46  ;;  %v645_v57 = vand.u32 2147483647, %v635_v46  ;;  %vm641_vm15 = vweird.f32 %v635_v46 }
 0x32f   :  { %v648_v61 = vor.u32 1.1754944e-38, %v647_v54  ;;  %vm646_vm1 = vcmp.eq.f32.partialorder %v645_v57, 8.507059e+37 }
 0x333   :  { %v715_v48 = vpop.eup %714 }
 0x334   :  { %v637_v50 = vmul.f32 %v715_v48, %v635_v46  ;;  %vm642_vm13 = vweird.f32 %v715_v48 }
 0x335   :  { %vm643_vm0 = vmor %vm641_vm15, %vm642_vm13 }
 0x336   :  { %v638_v53 = vsub.f32 1.0, %v637_v50 }
 0x338   :  { %v639_v56 = vmul.f32 %v715_v48, %v638_v53 }
 0x33a   :  { %v640_v59 = vadd.f32 %v715_v48, %v639_v56 }
 0x33c   :  { %v644_v62 = vsel %vm643_vm0, %v715_v48, %v640_v59 }
 0x33d   :  { %v649_v63 = vsel %vm646_vm1, %v648_v61, %v644_v62 }
 0x33e   :  { %v650_v1 = vmul.f32 %v709_v35, %v649_v63 }
 0x340   :  { %v655_v3 = vsel %vm565_vm5, %v621_v0, %v650_v1 }
 0x341   :  { %v657_v4 = vsel %vm656_vm2, %v655_v3, %v653_v2 }
 0x342   :  { %v659_v5 = vsel %vm658_vm3, %v657_v4, 0.0 }
 0x343   :  { %662 = vst.msk [vmem:[%s1146_s15 + $0x8] sm:$0xff] %vm661_vm4, %v659_v5 }
 0x344   :  { %667 = vsyncpa [#allocation4], 1 }
 0x345   :  { %668 = vsyncpa [#allocation6], 1 }

</bundles_post_ra>
